<compile_context>
chip_gen: v7x
topology: tpu7x:2x2x1
jax: 0.10.0
libtpu: 0.0.40
codegen_flags: <defaults>
</compile_context>

<pallas_src>
import numpy as np

import jax
import jax.numpy as jnp
from jax.experimental import pallas as pl
from jax.experimental.pallas import tpu as pltpu


def _bias_only_kernel(bias_ref, out_ref):
    # Single scalar copy on the scalar path (SMEM -> sreg -> SMEM).
    out_ref[0] = bias_ref[0]


def bias_only_forward(bias: jax.Array) -> jax.Array:
    """Pallas equivalent of BiasOnly.forward(): returns the bias parameter.

    Args:
      bias: f32 array of shape (1,) — the module's only parameter.
    Returns:
      f32 array of shape (1,), value-identical to `bias`.
    """
    return pl.pallas_call(
        _bias_only_kernel,
        out_shape=jax.ShapeDtypeStruct(bias.shape, bias.dtype),
        in_specs=[pl.BlockSpec(memory_space=pltpu.SMEM)],
        out_specs=pl.BlockSpec(memory_space=pltpu.SMEM),
        # Advisory: tell XLA's scheduler this call is essentially free.
        cost_estimate=pl.CostEstimate(flops=0, transcendentals=0, bytes_accessed=0),
    )(bias)


if __name__ == "__main__":
    # Deterministic parameter init, matching nn.Parameter(torch.zeros(1)).
    # (PRNGKey(0) created for protocol consistency; the module initializes its
    # bias to zeros, so no random draw is needed.)
    _ = jax.random.PRNGKey(0)
    bias = jnp.zeros((1,), dtype=jnp.float32)

    expected = np.asarray(bias).copy()

    out = bias_only_forward(bias)
    jax.block_until_ready(out)

    assert out.shape == (1,), out.shape
    assert out.dtype == jnp.float32, out.dtype
    assert bool(jnp.allclose(np.asarray(out), expected)), (out, expected)

    # The parameter buffer was NOT donated; the original array is still usable.
    assert bool(jnp.allclose(np.asarray(bias), expected)), bias

    print("KERNEL_OK")
</pallas_src>

<mosaic_0001>
module attributes {stable_mosaic.version = 11 : i64} {
  func.func @_bias_only_kernel(%arg0: memref<1xf32, #tpu.memory_space<smem>>, %arg1: memref<1xf32, #tpu.memory_space<smem>>) attributes {dimension_semantics = [], scalar_prefetch = 0 : i64, scratch_operands = 0 : i64, tpu.core_type = #tpu.core_type<tc>} {
    %c0 = arith.constant 0 : index
    %0 = memref.load %arg0[%c0] : memref<1xf32, #tpu.memory_space<smem>>
    %c0_0 = arith.constant 0 : index
    %1 = memref.load %arg1[%c0_0] : memref<1xf32, #tpu.memory_space<smem>>
    memref.store %0, %arg1[%c0_0] : memref<1xf32, #tpu.memory_space<smem>>
    return
  }
}

</mosaic_0001>

<bundles_post_ra>
// kernel: tpu_custom_call.1
= control target key start
LH: loop header
LB: loop body
LE: loop exit
PB: predicated region body
PF: predicated region fallthrough
CT: control target
= control target key end

     0   :  { %7 = vsyncpa [#allocation4], 0  ;;  %s65_s0 = inlined_call_operand.<no memory space> [shape: f32[1], index: 0, kind: input, shape index: {}]   ;;  %s66_s1 = inlined_call_operand.hbm [shape: f32[1], index: 1, kind: output, shape index: {}]  }
   0x1   :  { %12 = sst [smem:[#allocation3]] %s65_s0  ;;  %s27_s10 = scalar_lea.hbm %s66_s1, 16 }
   0x2   :  { %p28_p0 = scmp.ne.s32.totalorder %s66_s1, %s27_s10  ;;  %p31_p1 = scmp.lt.u32.totalorder %s27_s10, %s66_s1 }
   0x4   :  { %p33_p2 = pnand %p31_p1, %p28_p0 }
   0x6   :  { %36 = shalt.err (!%p33_p2)
}
   0x7   :  { %s39_s15 = smov [#allocation3]  }
   0x8   :  { %20 = dma.smem_to_hbm %s39_s15, 16, %s66_s1, [#allocation4]  }
   0x9   :  { %37 = dma.done.wait [#allocation4], 16  }
   0xa   :  { %38 = vsyncadd [#allocation4], 4294967280 }
   0xb   :  { %24 = sfence }
   0xc   :  { %25 = vsyncpa [#allocation4], 1 }

</bundles_post_ra>
